<compile_context>
chip_gen: v6e
topology: v6e:2x2x1
jax: 0.10.0
libtpu: 0.0.40
codegen_flags: <defaults>
</compile_context>

<pallas_src>
import math
import functools

import jax
import jax.numpy as jnp
from jax import lax
from jax.experimental import pallas as pl
from jax.experimental.pallas import tpu as pltpu


def _heads_per_step(num_heads, head_size):
    """Smallest divisor hp of num_heads with hp*head_size a multiple of 128
    (lane-dense stores / aligned slices); fall back to all heads (block spans
    the full H axis) when head_size doesn't allow it."""
    for hp in range(1, num_heads + 1):
        if num_heads % hp == 0 and (hp * head_size) % 128 == 0:
            return hp
    return num_heads


# ----------------------------------------------------------------------------
# Kernel: grid = (batch, head_group).  Each step:
#   * one bf16 MXU matmul x @ W_group -> (S, 3*G) f32
#   * per head in the group: QK^T as a contraction (no materialized transpose),
#     exp2 softmax (scale & log2e pre-folded into q weights), PV matmul,
#     lane-slice write into the (S, G) ctx output block.
#   * optional probs emission (exact divide) when emit_probs.
# ----------------------------------------------------------------------------
def _attn_group_kernel(x_ref, w_ref, b_ref, ctx_ref, probs_ref=None, *,
                       head_size, heads_per_step, emit_probs):
    hd = head_size
    G = heads_per_step * hd

    # bf16 MXU operands, f32 accumulation; bias (with folded q scale) stays f32.
    x = x_ref[0].astype(jnp.bfloat16)                                   # (S, H)
    qkv = jnp.dot(x, w_ref[...], preferred_element_type=jnp.float32)    # (S, 3G)
    qkv = qkv + b_ref[...]

    for h in range(heads_per_step):                                     # static unroll (small)
        lo = h * hd
        q = qkv[:, lo:lo + hd].astype(jnp.bfloat16)                     # (S, hd)
        k = qkv[:, G + lo:G + lo + hd].astype(jnp.bfloat16)             # (S, hd)
        v = qkv[:, 2 * G + lo:2 * G + lo + hd].astype(jnp.bfloat16)     # (S, hd)

        # Q.K^T as a contraction; q already carries log2(e)/sqrt(hd).
        s = lax.dot_general(q, k, (((1,), (1,)), ((), ())),
                            preferred_element_type=jnp.float32)         # (S, S)

        # Numerically-stable softmax in the exp2 domain (f32 elementwise).
        m = jnp.max(s, axis=-1, keepdims=True)
        e = jnp.exp2(s - m)                                             # EUP
        denom = jnp.sum(e, axis=-1, keepdims=True)

        if emit_probs:
            probs = e / denom                      # exact: probabilities are user-visible
            probs_ref[0, h] = probs.astype(probs_ref.dtype)
        else:
            probs = e * pl.reciprocal(denom, approx=True)               # EUP slot, hot path

        # TODO(synk): nn.Dropout(0.1) on probs is identity in eval mode; training-mode
        # dropout would use pltpu.prng_seed / pltpu.prng_random_bits here.

        ctx = jnp.dot(probs.astype(jnp.bfloat16), v,
                      preferred_element_type=jnp.float32)               # (S, hd)
        # Sub-slice write lands in the VMEM output block; the HBM writeback is the
        # full lane-dense (S, G) block done by the pipeline.
        ctx_ref[0, :, lo:lo + hd] = ctx.astype(ctx_ref.dtype)


# ----------------------------------------------------------------------------
# One-time parameter preprocessing (hoisted out of the per-call hot path).
# ----------------------------------------------------------------------------
def prepare_bert_self_attention_params(wq, bq, wk, bk, wv, bv, *, num_heads,
                                        param_dtype=jnp.bfloat16):
    """w*: (H, H) in [in, out] layout (transpose of nn.Linear.weight); b*: (H,).

    Returns head-group-ordered fused QKV weight/bias with log2(e)/sqrt(hd) folded
    into the q columns so the kernel softmax uses exp2 with no scale multiply.
    Call once at parameter load time and reuse across layers/steps.
    """
    H = wq.shape[0]
    assert H % num_heads == 0
    hd = H // num_heads
    hp = _heads_per_step(num_heads, hd)
    n_groups = num_heads // hp
    G = hp * hd

    qscale = math.log2(math.e) / math.sqrt(hd)

    def per_group(w):      # (H, H) -> (n_groups, H, G): group g's output columns
        return w.reshape(H, n_groups, G).transpose(1, 0, 2)

    def per_group_b(b):    # (H,) -> (n_groups, 1, G)
        return b.reshape(n_groups, 1, G)

    wg = jnp.concatenate([per_group(wq) * qscale, per_group(wk), per_group(wv)],
                         axis=-1)                                    # (n_groups, H, 3G)
    bg = jnp.concatenate([per_group_b(bq) * qscale, per_group_b(bk), per_group_b(bv)],
                         axis=-1)                                    # (n_groups, 1, 3G)

    # Flatten groups onto the lane axis: columns [g*3G:(g+1)*3G] are group g.
    w_fused = wg.transpose(1, 0, 2).reshape(H, 3 * H).astype(param_dtype)
    b_fused = bg.reshape(1, 3 * H).astype(jnp.float32)   # bias stays f32 (added to f32 acc)

    return dict(w=w_fused, b=b_fused, num_heads=num_heads, head_size=hd,
                heads_per_step=hp)


# ----------------------------------------------------------------------------
# Wrapper
# ----------------------------------------------------------------------------
def bert_self_attention(hidden_state, params, *, output_attention=False,
                        probs_dtype=jnp.bfloat16):
    """hidden_state: (B, S, H); params from prepare_bert_self_attention_params.

    Returns (context (B, S, H), probs (B, nh, S, S) or None).  Probs default to
    bf16 storage (halves the writeback-bound probs path); pass jnp.float32 to
    keep them full precision.
    """
    B, S, H = hidden_state.shape
    nh, hd, hp = params["num_heads"], params["head_size"], params["heads_per_step"]
    G = hp * hd
    n_groups = nh // hp

    # TODO(synk): add a query-tile grid axis (flash-style online softmax) before
    # targeting S >= ~1024 so the (S, S) scores never fully materialize.
    # TODO(synk): no additive attention_mask support (reference module takes none).

    kernel = functools.partial(_attn_group_kernel, head_size=hd,
                               heads_per_step=hp, emit_probs=output_attention)

    in_specs = [
        pl.BlockSpec((1, S, H), lambda b, g: (b, 0, 0)),       # x (resident across g)
        pl.BlockSpec((H, 3 * G), lambda b, g: (0, g)),         # per-group fused Wqkv (bf16)
        pl.BlockSpec((1, 3 * G), lambda b, g: (0, g)),         # per-group fused bias (f32)
    ]
    ctx_spec = pl.BlockSpec((1, S, G), lambda b, g: (b, 0, g))  # lane-dense ctx slab
    ctx_shape = jax.ShapeDtypeStruct((B, S, H), hidden_state.dtype)

    if output_attention:
        out_shape = (ctx_shape,
                     jax.ShapeDtypeStruct((B, nh, S, S), probs_dtype))
        out_specs = [ctx_spec,
                     pl.BlockSpec((1, hp, S, S), lambda b, g: (b, g, 0, 0))]
    else:
        out_shape = ctx_shape
        out_specs = ctx_spec

    out = pl.pallas_call(
        kernel,
        out_shape=out_shape,
        grid_spec=pltpu.PrefetchScalarGridSpec(
            num_scalar_prefetch=0,
            grid=(B, n_groups),
            in_specs=in_specs,
            out_specs=out_specs,
        ),
        compiler_params=pltpu.CompilerParams(
            dimension_semantics=("parallel", "parallel")),
    )(hidden_state, params["w"], params["b"])

    if output_attention:
        ctx, probs = out
        return ctx, probs
    return out, None


# ----------------------------------------------------------------------------
# Pure-JAX reference mirroring the PyTorch forward (eval-mode dropout).
# ----------------------------------------------------------------------------
def _reference(hidden_state, wq, bq, wk, bk, wv, bv, num_heads):
    B, S, H = hidden_state.shape
    hd = H // num_heads

    def split_heads(x):  # (B, S, H) -> (B, nh, S, hd)
        return x.reshape(B, S, num_heads, hd).transpose(0, 2, 1, 3)

    q = split_heads(hidden_state @ wq + bq)
    k = split_heads(hidden_state @ wk + bk)
    v = split_heads(hidden_state @ wv + bv)
    scores = jnp.einsum("bhqd,bhkd->bhqk", q, k) / math.sqrt(hd)
    probs = jax.nn.softmax(scores, axis=-1)
    ctx = jnp.einsum("bhqk,bhkd->bhqd", probs, v)
    ctx = ctx.transpose(0, 2, 1, 3).reshape(B, S, H)
    return ctx, probs


if __name__ == "__main__":
    # Small shapes consistent with the module.
    batch, seq_len, hidden_size = 2, 8, 32
    num_attention_head = 4

    key = jax.random.PRNGKey(0)
    kx, kq, kbq, kk, kbk, kv, kbv = jax.random.split(key, 7)

    hidden_state = jax.random.normal(kx, (batch, seq_len, hidden_size), jnp.float32)
    # nn.Linear(hidden, hidden): weight (out,in), bias (out,).  We store W^T = (in,out).
    s = 1.0 / math.sqrt(hidden_size)
    wq = jax.random.uniform(kq, (hidden_size, hidden_size), jnp.float32, -s, s)
    bq = jax.random.uniform(kbq, (hidden_size,), jnp.float32, -s, s)
    wk = jax.random.uniform(kk, (hidden_size, hidden_size), jnp.float32, -s, s)
    bk = jax.random.uniform(kbk, (hidden_size,), jnp.float32, -s, s)
    wv = jax.random.uniform(kv, (hidden_size, hidden_size), jnp.float32, -s, s)
    bv = jax.random.uniform(kbv, (hidden_size,), jnp.float32, -s, s)

    ctx_expected, probs_expected = _reference(hidden_state, wq, bq, wk, bk, wv, bv,
                                              num_attention_head)

    # One-time parameter preprocessing (fusion / scale folding / bf16 cast).
    params = prepare_bert_self_attention_params(
        wq, bq, wk, bk, wv, bv, num_heads=num_attention_head)

    # Path 1: output_attention=False (hot path, probs never materialized).
    ctx_fast, none_probs = bert_self_attention(hidden_state, params,
                                               output_attention=False)
    jax.block_until_ready(ctx_fast)
    assert none_probs is None

    # Path 2: output_attention=True (probs emitted, exact softmax divide, bf16 store).
    ctx_attn, probs = bert_self_attention(hidden_state, params,
                                          output_attention=True)
    jax.block_until_ready(ctx_attn)
    jax.block_until_ready(probs)

    # Tolerance relaxed vs. 1e-5: bf16 MXU operands, EUP approximate reciprocal
    # (hot path), and bf16 probs storage.
    tol = dict(atol=1e-2, rtol=1e-2)
    assert jnp.allclose(ctx_fast, ctx_expected, **tol)
    assert jnp.allclose(ctx_attn, ctx_expected, **tol)
    assert jnp.allclose(probs.astype(jnp.float32), probs_expected, **tol)

    print("KERNEL_OK")
</pallas_src>

<mosaic_0001>
module attributes {stable_mosaic.version = 11 : i64} {
  func.func @_attn_group_kernel(%arg0: i32, %arg1: i32, %arg2: memref<1x8x32xf32, #tpu.memory_space<vmem>>, %arg3: memref<32x96xbf16, #tpu.memory_space<vmem>>, %arg4: memref<1x96xf32, #tpu.memory_space<vmem>>, %arg5: memref<1x8x32xf32, #tpu.memory_space<vmem>>) attributes {dimension_semantics = [#tpu.dimension_semantics<parallel>, #tpu.dimension_semantics<parallel>], iteration_bounds = array<i64: 2, 1>, scalar_prefetch = 0 : i64, scratch_operands = 0 : i64, tpu.core_type = #tpu.core_type<tc>, window_params = [{transform_indices = @transform_0, window_bounds = array<i64: 1, 8, 32>}, {transform_indices = @transform_1, window_bounds = array<i64: 32, 96>}, {transform_indices = @transform_2, window_bounds = array<i64: 1, 96>}, {transform_indices = @transform_3, window_bounds = array<i64: 1, 8, 32>}]} {
    %c0 = arith.constant 0 : index
    %c0_0 = arith.constant 0 : index
    %c0_1 = arith.constant 0 : index
    %0 = vector.load %arg2[%c0, %c0_0, %c0_1] : memref<1x8x32xf32, #tpu.memory_space<vmem>>, vector<1x8x32xf32>
    %1 = vector.shape_cast %0 : vector<1x8x32xf32> to vector<8x32xf32>
    %2 = arith.truncf %1 : vector<8x32xf32> to vector<8x32xbf16>
    %c0_2 = arith.constant 0 : index
    %c0_3 = arith.constant 0 : index
    %3 = vector.load %arg3[%c0_2, %c0_3] : memref<32x96xbf16, #tpu.memory_space<vmem>>, vector<32x96xbf16>
    %cst = arith.constant dense<0.000000e+00> : vector<8x96xf32>
    %4 = tpu.matmul %2, %3, %cst {dimension_numbers = #tpu.dot_dimension_numbers<[1], [0], [0], [1], [0, 0, 1, 1], [], []>} : vector<8x32xbf16>, vector<32x96xbf16>, vector<8x96xf32> -> vector<8x96xf32>
    %c0_4 = arith.constant 0 : index
    %c0_5 = arith.constant 0 : index
    %5 = vector.load %arg4[%c0_4, %c0_5] : memref<1x96xf32, #tpu.memory_space<vmem>>, vector<1x96xf32>
    %6 = vector.broadcast %5 : vector<1x96xf32> to vector<8x96xf32>
    %7 = arith.addf %4, %6 : vector<8x96xf32>
    %8 = vector.extract_strided_slice %7 {offsets = [0, 0], sizes = [8, 8], strides = [1, 1]} : vector<8x96xf32> to vector<8x8xf32>
    %9 = arith.truncf %8 : vector<8x8xf32> to vector<8x8xbf16>
    %10 = vector.extract_strided_slice %7 {offsets = [0, 32], sizes = [8, 8], strides = [1, 1]} : vector<8x96xf32> to vector<8x8xf32>
    %11 = arith.truncf %10 : vector<8x8xf32> to vector<8x8xbf16>
    %12 = vector.extract_strided_slice %7 {offsets = [0, 64], sizes = [8, 8], strides = [1, 1]} : vector<8x96xf32> to vector<8x8xf32>
    %13 = arith.truncf %12 : vector<8x8xf32> to vector<8x8xbf16>
    %cst_6 = arith.constant dense<0.000000e+00> : vector<8x8xf32>
    %14 = tpu.matmul %9, %11, %cst_6 {dimension_numbers = #tpu.dot_dimension_numbers<[1], [1], [0], [0], [0, 0, 1, 0], [], []>} : vector<8x8xbf16>, vector<8x8xbf16>, vector<8x8xf32> -> vector<8x8xf32>
    %cst_7 = arith.constant dense<0xFF800000> : vector<8xf32>
    %15 = vector.multi_reduction <maximumf>, %14, %cst_7 [1] : vector<8x8xf32> to vector<8xf32>
    %16 = vector.shape_cast %15 : vector<8xf32> to vector<8x1xf32>
    %17 = vector.broadcast %16 : vector<8x1xf32> to vector<8x8xf32>
    %18 = arith.subf %14, %17 : vector<8x8xf32>
    %19 = math.exp2 %18 : vector<8x8xf32>
    %cst_8 = arith.constant dense<0.000000e+00> : vector<8xf32>
    %20 = vector.multi_reduction <add>, %19, %cst_8 [1] : vector<8x8xf32> to vector<8xf32>
    %21 = vector.shape_cast %20 : vector<8xf32> to vector<8x1xf32>
    %22 = tpu.reciprocal %21 {approx = true} : vector<8x1xf32> -> vector<8x1xf32>
    %23 = vector.broadcast %22 : vector<8x1xf32> to vector<8x8xf32>
    %24 = arith.mulf %19, %23 : vector<8x8xf32>
    %25 = arith.truncf %24 : vector<8x8xf32> to vector<8x8xbf16>
    %cst_9 = arith.constant dense<0.000000e+00> : vector<8x8xf32>
    %26 = tpu.matmul %25, %13, %cst_9 {dimension_numbers = #tpu.dot_dimension_numbers<[1], [0], [0], [1], [0, 0, 1, 1], [], []>} : vector<8x8xbf16>, vector<8x8xbf16>, vector<8x8xf32> -> vector<8x8xf32>
    %c0_10 = arith.constant 0 : index
    %c0_11 = arith.constant 0 : index
    %c0_12 = arith.constant 0 : index
    %27 = vector.load %arg5[%c0_10, %c0_11, %c0_12] : memref<1x8x32xf32, #tpu.memory_space<vmem>>, vector<1x8x8xf32>
    %28 = vector.shape_cast %27 : vector<1x8x8xf32> to vector<8x8xf32>
    %29 = vector.shape_cast %26 : vector<8x8xf32> to vector<1x8x8xf32>
    tpu.vector_store %arg5[%c0_10, %c0_11, %c0_12], %29 {strides = array<i32>} : memref<1x8x32xf32, #tpu.memory_space<vmem>>, vector<1x8x8xf32>,
    %30 = vector.extract_strided_slice %7 {offsets = [0, 8], sizes = [8, 8], strides = [1, 1]} : vector<8x96xf32> to vector<8x8xf32>
    %31 = arith.truncf %30 : vector<8x8xf32> to vector<8x8xbf16>
    %32 = vector.extract_strided_slice %7 {offsets = [0, 40], sizes = [8, 8], strides = [1, 1]} : vector<8x96xf32> to vector<8x8xf32>
    %33 = arith.truncf %32 : vector<8x8xf32> to vector<8x8xbf16>
    %34 = vector.extract_strided_slice %7 {offsets = [0, 72], sizes = [8, 8], strides = [1, 1]} : vector<8x96xf32> to vector<8x8xf32>
    %35 = arith.truncf %34 : vector<8x8xf32> to vector<8x8xbf16>
    %cst_13 = arith.constant dense<0.000000e+00> : vector<8x8xf32>
    %36 = tpu.matmul %31, %33, %cst_13 {dimension_numbers = #tpu.dot_dimension_numbers<[1], [1], [0], [0], [0, 0, 1, 0], [], []>} : vector<8x8xbf16>, vector<8x8xbf16>, vector<8x8xf32> -> vector<8x8xf32>
    %cst_14 = arith.constant dense<0xFF800000> : vector<8xf32>
    %37 = vector.multi_reduction <maximumf>, %36, %cst_14 [1] : vector<8x8xf32> to vector<8xf32>
    %38 = vector.shape_cast %37 : vector<8xf32> to vector<8x1xf32>
    %39 = vector.broadcast %38 : vector<8x1xf32> to vector<8x8xf32>
    %40 = arith.subf %36, %39 : vector<8x8xf32>
    %41 = math.exp2 %40 : vector<8x8xf32>
    %cst_15 = arith.constant dense<0.000000e+00> : vector<8xf32>
    %42 = vector.multi_reduction <add>, %41, %cst_15 [1] : vector<8x8xf32> to vector<8xf32>
    %43 = vector.shape_cast %42 : vector<8xf32> to vector<8x1xf32>
    %44 = tpu.reciprocal %43 {approx = true} : vector<8x1xf32> -> vector<8x1xf32>
    %45 = vector.broadcast %44 : vector<8x1xf32> to vector<8x8xf32>
    %46 = arith.mulf %41, %45 : vector<8x8xf32>
    %47 = arith.truncf %46 : vector<8x8xf32> to vector<8x8xbf16>
    %cst_16 = arith.constant dense<0.000000e+00> : vector<8x8xf32>
    %48 = tpu.matmul %47, %35, %cst_16 {dimension_numbers = #tpu.dot_dimension_numbers<[1], [0], [0], [1], [0, 0, 1, 1], [], []>} : vector<8x8xbf16>, vector<8x8xbf16>, vector<8x8xf32> -> vector<8x8xf32>
    %c0_17 = arith.constant 0 : index
    %c0_18 = arith.constant 0 : index
    %c8 = arith.constant 8 : index
    %49 = vector.load %arg5[%c0_17, %c0_18, %c8] : memref<1x8x32xf32, #tpu.memory_space<vmem>>, vector<1x8x8xf32>
    %50 = vector.shape_cast %49 : vector<1x8x8xf32> to vector<8x8xf32>
    %51 = vector.shape_cast %48 : vector<8x8xf32> to vector<1x8x8xf32>
    tpu.vector_store %arg5[%c0_17, %c0_18, %c8], %51 {strides = array<i32>} : memref<1x8x32xf32, #tpu.memory_space<vmem>>, vector<1x8x8xf32>,
    %52 = vector.extract_strided_slice %7 {offsets = [0, 16], sizes = [8, 8], strides = [1, 1]} : vector<8x96xf32> to vector<8x8xf32>
    %53 = arith.truncf %52 : vector<8x8xf32> to vector<8x8xbf16>
    %54 = vector.extract_strided_slice %7 {offsets = [0, 48], sizes = [8, 8], strides = [1, 1]} : vector<8x96xf32> to vector<8x8xf32>
    %55 = arith.truncf %54 : vector<8x8xf32> to vector<8x8xbf16>
    %56 = vector.extract_strided_slice %7 {offsets = [0, 80], sizes = [8, 8], strides = [1, 1]} : vector<8x96xf32> to vector<8x8xf32>
    %57 = arith.truncf %56 : vector<8x8xf32> to vector<8x8xbf16>
    %cst_19 = arith.constant dense<0.000000e+00> : vector<8x8xf32>
    %58 = tpu.matmul %53, %55, %cst_19 {dimension_numbers = #tpu.dot_dimension_numbers<[1], [1], [0], [0], [0, 0, 1, 0], [], []>} : vector<8x8xbf16>, vector<8x8xbf16>, vector<8x8xf32> -> vector<8x8xf32>
    %cst_20 = arith.constant dense<0xFF800000> : vector<8xf32>
    %59 = vector.multi_reduction <maximumf>, %58, %cst_20 [1] : vector<8x8xf32> to vector<8xf32>
    %60 = vector.shape_cast %59 : vector<8xf32> to vector<8x1xf32>
    %61 = vector.broadcast %60 : vector<8x1xf32> to vector<8x8xf32>
    %62 = arith.subf %58, %61 : vector<8x8xf32>
    %63 = math.exp2 %62 : vector<8x8xf32>
    %cst_21 = arith.constant dense<0.000000e+00> : vector<8xf32>
    %64 = vector.multi_reduction <add>, %63, %cst_21 [1] : vector<8x8xf32> to vector<8xf32>
    %65 = vector.shape_cast %64 : vector<8xf32> to vector<8x1xf32>
    %66 = tpu.reciprocal %65 {approx = true} : vector<8x1xf32> -> vector<8x1xf32>
    %67 = vector.broadcast %66 : vector<8x1xf32> to vector<8x8xf32>
    %68 = arith.mulf %63, %67 : vector<8x8xf32>
    %69 = arith.truncf %68 : vector<8x8xf32> to vector<8x8xbf16>
    %cst_22 = arith.constant dense<0.000000e+00> : vector<8x8xf32>
    %70 = tpu.matmul %69, %57, %cst_22 {dimension_numbers = #tpu.dot_dimension_numbers<[1], [0], [0], [1], [0, 0, 1, 1], [], []>} : vector<8x8xbf16>, vector<8x8xbf16>, vector<8x8xf32> -> vector<8x8xf32>
    %c0_23 = arith.constant 0 : index
    %c0_24 = arith.constant 0 : index
    %c16 = arith.constant 16 : index
    %71 = vector.load %arg5[%c0_23, %c0_24, %c16] : memref<1x8x32xf32, #tpu.memory_space<vmem>>, vector<1x8x8xf32>
    %72 = vector.shape_cast %71 : vector<1x8x8xf32> to vector<8x8xf32>
    %73 = vector.shape_cast %70 : vector<8x8xf32> to vector<1x8x8xf32>
    tpu.vector_store %arg5[%c0_23, %c0_24, %c16], %73 {strides = array<i32>} : memref<1x8x32xf32, #tpu.memory_space<vmem>>, vector<1x8x8xf32>,
    %74 = vector.extract_strided_slice %7 {offsets = [0, 24], sizes = [8, 8], strides = [1, 1]} : vector<8x96xf32> to vector<8x8xf32>
    %75 = arith.truncf %74 : vector<8x8xf32> to vector<8x8xbf16>
    %76 = vector.extract_strided_slice %7 {offsets = [0, 56], sizes = [8, 8], strides = [1, 1]} : vector<8x96xf32> to vector<8x8xf32>
    %77 = arith.truncf %76 : vector<8x8xf32> to vector<8x8xbf16>
    %78 = vector.extract_strided_slice %7 {offsets = [0, 88], sizes = [8, 8], strides = [1, 1]} : vector<8x96xf32> to vector<8x8xf32>
    %79 = arith.truncf %78 : vector<8x8xf32> to vector<8x8xbf16>
    %cst_25 = arith.constant dense<0.000000e+00> : vector<8x8xf32>
    %80 = tpu.matmul %75, %77, %cst_25 {dimension_numbers = #tpu.dot_dimension_numbers<[1], [1], [0], [0], [0, 0, 1, 0], [], []>} : vector<8x8xbf16>, vector<8x8xbf16>, vector<8x8xf32> -> vector<8x8xf32>
    %cst_26 = arith.constant dense<0xFF800000> : vector<8xf32>
    %81 = vector.multi_reduction <maximumf>, %80, %cst_26 [1] : vector<8x8xf32> to vector<8xf32>
    %82 = vector.shape_cast %81 : vector<8xf32> to vector<8x1xf32>
    %83 = vector.broadcast %82 : vector<8x1xf32> to vector<8x8xf32>
    %84 = arith.subf %80, %83 : vector<8x8xf32>
    %85 = math.exp2 %84 : vector<8x8xf32>
    %cst_27 = arith.constant dense<0.000000e+00> : vector<8xf32>
    %86 = vector.multi_reduction <add>, %85, %cst_27 [1] : vector<8x8xf32> to vector<8xf32>
    %87 = vector.shape_cast %86 : vector<8xf32> to vector<8x1xf32>
    %88 = tpu.reciprocal %87 {approx = true} : vector<8x1xf32> -> vector<8x1xf32>
    %89 = vector.broadcast %88 : vector<8x1xf32> to vector<8x8xf32>
    %90 = arith.mulf %85, %89 : vector<8x8xf32>
    %91 = arith.truncf %90 : vector<8x8xf32> to vector<8x8xbf16>
    %cst_28 = arith.constant dense<0.000000e+00> : vector<8x8xf32>
    %92 = tpu.matmul %91, %79, %cst_28 {dimension_numbers = #tpu.dot_dimension_numbers<[1], [0], [0], [1], [0, 0, 1, 1], [], []>} : vector<8x8xbf16>, vector<8x8xbf16>, vector<8x8xf32> -> vector<8x8xf32>
    %c0_29 = arith.constant 0 : index
    %c0_30 = arith.constant 0 : index
    %c24 = arith.constant 24 : index
    %93 = vector.load %arg5[%c0_29, %c0_30, %c24] : memref<1x8x32xf32, #tpu.memory_space<vmem>>, vector<1x8x8xf32>
    %94 = vector.shape_cast %93 : vector<1x8x8xf32> to vector<8x8xf32>
    %95 = vector.shape_cast %92 : vector<8x8xf32> to vector<1x8x8xf32>
    tpu.vector_store %arg5[%c0_29, %c0_30, %c24], %95 {strides = array<i32>} : memref<1x8x32xf32, #tpu.memory_space<vmem>>, vector<1x8x8xf32>,
    return
  }
  func.func @transform_0(%arg0: i32, %arg1: i32) -> (i32, i32, i32) {
    %c0_i32 = arith.constant 0 : i32
    %c0_i32_0 = arith.constant 0 : i32
    %c0_i32_1 = arith.constant 0 : i32
    return %arg0, %c0_i32, %c0_i32_0 : i32, i32, i32
  }
  func.func @transform_1(%arg0: i32, %arg1: i32) -> (i32, i32) {
    %c0_i32 = arith.constant 0 : i32
    %c0_i32_0 = arith.constant 0 : i32
    return %c0_i32, %arg1 : i32, i32
  }
  func.func @transform_2(%arg0: i32, %arg1: i32) -> (i32, i32) {
    %c0_i32 = arith.constant 0 : i32
    %c0_i32_0 = arith.constant 0 : i32
    return %c0_i32, %arg1 : i32, i32
  }
  func.func @transform_3(%arg0: i32, %arg1: i32) -> (i32, i32, i32) {
    %c0_i32 = arith.constant 0 : i32
    %c0_i32_0 = arith.constant 0 : i32
    return %arg0, %c0_i32, %arg1 : i32, i32, i32
  }
}

</mosaic_0001>

<bundles_post_ra>
// kernel: tpu_custom_call.1
= control target key start
LH: loop header
LB: loop body
LE: loop exit
PB: predicated region body
PF: predicated region fallthrough
CT: control target
= control target key end

     0   :  { %8 = vsyncpa [#allocation3], 0  ;;  %s1528_s0 = inlined_call_operand.hbm [shape: f32[2,8,32], index: 0, kind: input, shape index: {}]   ;;  %s1529_s1 = inlined_call_operand.hbm [shape: bf16[32,96], index: 1, kind: input, shape index: {}]   ;;  %s1530_s2 = inlined_call_operand.vmem [shape: f32[1,96], index: 2, kind: input, shape index: {}]   ;;  %s1531_s3 = inlined_call_operand.hbm [shape: f32[2,8,32], index: 3, kind: output, shape index: {}]  }
   0x1   :  { %10 = vsyncpa [#allocation3 + $0x1], 0 }
   0x2   :  { %11 = vsyncpa [#allocation6], 0 }
   0x3   :  { %12 = vsyncpa [#allocation4], 0 }
   0x4   :  { %14 = vsyncpa [#allocation4 + $0x1], 0  ;;  %s1274_s12 = smov 0   ;;  %s1276_s13 = smov 0  }
   0x5   :  { %s1278_s14 = smov 0   ;;  %s1280_s15 = smov 0  }
   0x6   :  { %s1282_s16 = smov 0   ;;  %s1284_s17 = smov 0  }
   0x7 LB: > { %s881_s18 = sadd.s32 4294967295, %s1231_s17   ;;  %s882_s19 = sadd.s32 4294967294, %s1231_s17   ;;  %s1231_s17 = sphi %s1284_s17, %s20_s17   ;;  %s1227_s16 = sphi %s1282_s16, %s1549_s16   ;;  %s1223_s15 = sphi %s1280_s15, %s1548_s15   ;;  %s1219_s14 = sphi %s1278_s14, %s1547_s14   ;;  %s1215_s13 = sphi %s1276_s13, %s1546_s13   ;;  %s1211_s12 = sphi %s1274_s12, %s1545_s12  }
   0x8   : > { %p52_p0 = scmp.ne.s32.totalorder %s1215_s13, %s1211_s12  ;;  %p1308_p1 = scmp.eq.s32.totalorder %s881_s18, 0 }
   0x9   : > { %p1312_p2 = scmp.eq.s32.totalorder %s881_s18, 1  ;;  %p136_p3 = scmp.eq.s32.totalorder %s882_s19, 1 }
   0xa   : > { %p1318_p4 = por %p1308_p1, %p52_p0  ;;  %p883_p5 = scmp.ge.s32.totalorder %s1231_s17, 1 }
   0xb   : > { %p1323_p6 = por %p136_p3, %p52_p0  ;;  %p143_p7 = scmp.lt.s32.totalorder %s1231_s17, 3 }
   0xc   : > { %s1535_s22 = scalar_select %p1318_p4, 1, 0 }
   0xd   : > { %s1536_s23 = scalar_select %p1323_p6, 1, 0 }
   0xe   : > { %p1328_p8 = pnand %p883_p5, %p143_p7  ;;  %s1233_s25 = smov [#allocation5]  }
   0xf   : > { %s157_s26 = sshll.u32 %s1233_s25, 4  ;;  %s32_s28 = sadd.s32 1, %s1227_s16  ;;  %s158_s26 = int_to_ptr.vmem [resolvable:$true] %s157_s26 }
  0x10   : > { %p992_p9 = pneg %p1328_p8  ;;  %s1104_s29 = scalar_lea.vmem %s158_s26, 256 }
  0x11   : > { %p1105_p13 = scmp.ne.s32.totalorder %s158_s26, %s1104_s29  ;;  %p1112_p5 = scmp.lt.s32.totalorder %s158_s26, %s158_s26 }
  0x12   : > { %p1337_p11 = pnand %p992_p9, %p1308_p1  ;;  %p1113_p7 = scmp.lt.s32.totalorder %s1104_s29, %s1104_s29 }
  0x14   : > { %p1095_p12 = pneg %p1337_p11  ;;  %p1114_p6 = por %p1113_p7, %p1112_p5 }
  0x16   : > { %p1107_p0 = pnand %p1105_p13, %p1095_p12 }
  0x18   : > { %p1108_p3 = pneg %p1107_p0 }
  0x1a   : > { %p1115_p4 = pnand %p1114_p6, %p1108_p3 }
  0x1c   : > { %1118 = shalt.err (!%p1115_p4)
}
  0x1d   : > { %s1234_s30 = smov 64   ;;  %s1235_s4 = smov 4  }
  0x1e   : > { %995 = dma.hbm_to_vmem [thread:$0]  (!%p1337_p11), %s1529_s1, 256, %s158_s26, [#allocation6], %s1234_s30, %s1234_s30, %s1235_s4  }
  0x1f   : > { %p34_p6 = scmp.ge.s32.totalorder %s32_s28, 2  ;;  %s39_s7 = sadd.s32 1, %s1219_s14 }
  0x20   : > { %p46_p4 = scmp.ne.s32.totalorder %s1219_s14, %s1215_s13  ;;  %p47_p9 = scmp.eq.s32.totalorder %s1231_s17, 0 }
  0x21   : > { %s1551_s28 = smov (%p34_p6, %s32_s28), 0  ;;  %p1005_p0 = scmp.lt.s32.totalorder %s1231_s17, 2 }
  0x22   : > { %p1355_p12 = por %p47_p9, %p46_p4  ;;  %p1361_p13 = por %p1312_p2, %p46_p4 }
  0x23   : > { %s36_s10 = ssub.s32 %s1227_s16, %s1551_s28  ;;  %s177_s11 = sand.u32 1, %s1219_s14  }
  0x24   : > { %p37_p11 = scmp.eq.s32.totalorder %s36_s10, 0  ;;  %s887_s18 = sshll.u32 %s177_s11, 3 }
  0x25   : > { %s888_s25 = sshll.u32 %s1227_s16, 7  ;;  %s181_s30 = scalar_lea.vmem [#allocation2], %s887_s18 }
  0x26   : > { %s1370_s19 = scalar_select %p37_p11, %s1219_s14, %s39_s7  }
  0x27   : > { %s186_s29 = scalar_lea.hbm %s1528_s0, %s888_s25  ;;  %s188_s4 = sshll.u32 %s181_s30, 4  ;;  %s189_s4 = int_to_ptr.vmem [resolvable:$true] %s188_s4 }
  0x28   : > { %p1378_p2 = pnand %p1005_p0, %p1355_p12  ;;  %s178_s5 = scalar_lea.sflag [#allocation3], %s177_s11 }
  0x29   : > { %s1132_s6 = scalar_lea.vmem %s189_s4, 128  ;;  %s1236_s7 = smov [#allocation2]  }
  0x2a   : > { %p1121_p3 = pneg %p1378_p2  ;;  %p1133_p5 = scmp.ne.s32.totalorder %s189_s4, %s1132_s6 }
  0x2b   : > { %s1137_s10 = sshll.u32 %s1236_s7, 4  ;;  %s1138_s10 = int_to_ptr.vmem [resolvable:$false] %s1137_s10 }
  0x2c   : > { %p1135_p7 = pnand %p1133_p5, %p1121_p3  ;;  %s1139_s25 = scalar_lea.vmem %s1138_s10, 256 }
  0x2d   : > { %p1140_p4 = scmp.lt.s32.totalorder %s189_s4, %s1138_s10  ;;  %p1141_p9 = scmp.lt.s32.totalorder %s1139_s25, %s1132_s6 }
  0x2e   : > { %p1136_p6 = pneg %p1135_p7 }
  0x2f   : > { %p1142_p11 = por %p1141_p9, %p1140_p4 }
  0x31   : > { %p1143_p10 = pnand %p1142_p11, %p1136_p6 }
  0x33   : > { %1146 = shalt.err (!%p1143_p10)
}
  0x34   : > { %999 = dma.hbm_to_vmem [thread:$0]  (!%p1378_p2), %s186_s29, 128, %s189_s4, %s178_s5  }
  0x35   : > { %197 = sbr.rel (%p1328_p8) target bundleno = 1278 (0x4fe), region = 32  ;;  %s1389_s8 = sand.u32 (!%p1328_p8), 1, %s1215_s13  }
  0x36   : > { %s890_s11 = sshll.u32 (!%p1328_p8), %s1389_s8, 3  ;;  %s200_s18 = scalar_lea.sflag (!%p1328_p8), [#allocation3], %s1389_s8 }
  0x37   : > { %s203_s26 = scalar_lea.vmem (!%p1328_p8), [#allocation2], %s890_s11  ;;  %p1542_p12 = scmp.ne.s32.totalorder (!%p1328_p8), %s1535_s22, 0 }
  0x3a   : > { %1198 = dma.done.wait (%p1542_p12), %s200_s18, 128  }
  0x3b   : > { %1200 = vsyncadd (%p1542_p12), %s200_s18, 4294967168 }
  0x3c   : > { %1202 = dma.done.wait (%p1308_p1), [#allocation6], 256  }
  0x3d   : > { %1204 = vsyncadd (%p1308_p1), [#allocation6], 4294967040  ;;  %v1237_v0 = vmov 0.0   ;;  %vm1238_vm0 = vmmov 0   ;;  %v1075_v1 = vld [vmem:[#allocation5 + $0x8] sm:$0xff]   ;;  %v1076_v2 = vld [vmem:[#allocation5] sm:$0xff]  }
  0x3e   : > { %928 = vmatprep.subr.bf16.mxu0 %v1237_v0  ;;  %932 = vmatprep.mubr.msk.bf16.mxu0 %vm1238_vm0, %v1237_v0  ;;  %v237_v3 = vld [vmem:[%s203_s26] sm:$0xff]  ;;  %vm262_vm1 = vcmask 261120   ;;  %s1239_s24 = smov 120   ;;  %s1240_s27 = smov 96   ;;  %vm310_vm2 = vcmask 64512   ;;  %vm373_vm3 = vcmask 1043456  }
  0x3f   : > { %936 = vmatprep.subr.bf16.mxu1 %v1237_v0  ;;  %938 = vmatprep.mubr.msk.bf16.mxu1 %vm1238_vm0, %v1237_v0  ;;  %v238_v4 = vpack.c.bf16 %v237_v3, %v237_v3  ;;  %v893_v5 = vld [vmem:[%s1530_s2] ss:$0 sm:$0xff]  ;;  %s1241_s29 = smov 80   ;;  %s1242_s30 = smov 88   ;;  %vm531_vm4 = vcmask 130112   ;;  %vm646_vm5 = vcmask 195712  }
  0x40   : > { %929 = vmatpush3.bf16.msra.mxu0 %v1075_v1  ;;  %s1243_s4 = smov 72   ;;  %s1244_s21 = smov 112   ;;  %vm761_vm6 = vcmask 261312  }
  0x41   : > { %930 = vmatprep.subr.bf16.mxu0 %v1237_v0  ;;  %s1245_s5 = smov 104   ;;  %s1246_s6 = smov 56  }
  0x42   : > { %s1247_s7 = smov 64   ;;  %s1248_s10 = smov 40  }
  0x43   : > { %s1249_s25 = smov 48   ;;  %s1474_s18 = scalar_lea.vmem [#allocation7], %s890_s11 }
  0x44   : > { %931 = vmatpush3.bf16.msra.mxu0 %v1076_v2  ;;  %s1250_s26 = smov 8   ;;  %s1251_s20 = smov 16  }
  0x45   : > { %942 = vmatprep.subr.bf16.mxu0 %v1237_v0  ;;  %s1252_s11 = smov 24   ;;  %s906_s22 = sshll.u32 %s1223_s15, 7 }
  0x47   : > { %933 = vmatmul.mubr.msk.bf16.vlgmr.msra.gmra.mxu0 %vm262_vm1, %v238_v4 }
  0x48   : > { %944 = vmatprep.mubr.msk.bf16.mxu0 %vm1238_vm0, %v1237_v0 }
 0x107   : > { %v300_v6 = vpop.f32.mrf.mxu0 }
 0x108   : > { %v301_v7 = vadd.f32 %v893_v5, %v300_v6 }
 0x109   : > { %v934_v8 = vpop.f32.mrf.mxu0 }
 0x10a   : > { %v1416_v9 = vpack.c.bf16 %v301_v7, %v301_v7 }
 0x10b   : > { %v303_v10 = vpop.f32.mrf.mxu0 }
 0x10c   : > { %418 = vrot.lane.b32.xlu1 %v1416_v9, %s1239_s24  ;;  %308 = vrot.lane.b32.xlu0 %v1416_v9, %s1240_s27  ;;  %s778_s24 = sshll.u32 %s1474_s18, 4  ;;  %s779_s24 = int_to_ptr.vmem [resolvable:$true] %s778_s24 }
 0x10d   : > { %v935_v11 = vpop.f32.mrf.mxu0 }
 0x110   : > { %535 = vrot.lane.b32.xlu1 %v1416_v9, %s1241_s29  ;;  %420 = vrot.lane.b32.xlu0 %v1416_v9, %s1242_s30  ;;  %s1485_s30 = scalar_lea.hbm %s1531_s3, %s906_s22 }
 0x114   : > { %650 = vrot.lane.b32.xlu1 %v1416_v9, %s1243_s4  ;;  %533 = vrot.lane.b32.xlu0 %v1416_v9, %s1244_s21  ;;  %s764_s4 = scalar_lea.sflag [#allocation4], %s1389_s8  ;;  %s1147_s21 = scalar_lea.vmem %s779_s24, 128 }
 0x115   : > { %p1148_p1 = scmp.ne.s32.totalorder %s779_s24, %s1147_s21 }
 0x117   : > { %p1149_p8 = pnand %p1148_p1, %p1361_p13 }
 0x118   : > { %648 = vrot.lane.b32.xlu0 %v1416_v9, %s1245_s5  ;;  %s1253_s5 = smov [#allocation7]  }
 0x119   : > { %p1150_p10 = pneg %p1149_p8 }
 0x17e   : > { %v309_v12 = vpop.permute.xlu0 %308  ;;  %v419_v15 = vpop.permute.xlu1 %418 }
 0x17f   : > { %v315_v13 = vsel %vm310_vm2, %v309_v12, 0 }
 0x180   : > { %937 = vmatpush3.bf16.xpose.msra.mxu1 %v315_v13 }
 0x181   : > { %948 = vmatprep.subr.bf16.mxu1 %v1237_v0 }
 0x182   : > { %v421_v14 = vpop.permute.xlu0 %420  ;;  %v536_v17 = vpop.permute.xlu1 %535 }
 0x183   : > { %v426_v16 = vsel %vm310_vm2, %v421_v14, 0  ;;  %v541_v18 = vsel %vm310_vm2, %v536_v17, 0 }
 0x186   : > { %v651_v19 = vpop.permute.xlu1 %650  ;;  %v534_v20 = vpop.permute.xlu0 %533 }
 0x187   : > { %939 = vmatmul.mubr.msk.bf16.vlgmr.msra.gmra.mxu1 %vm310_vm2, %v1416_v9  ;;  %v656_v21 = vsel %vm310_vm2, %v651_v19, 0 }
 0x188   : > { %949 = vmatpush3.bf16.xpose.msra.mxu1 %v426_v16  ;;  %950 = vmatprep.mubr.msk.bf16.mxu1 %vm1238_vm0, %v1237_v0 }
 0x189   : > { %960 = vmatprep.subr.bf16.mxu1 %v1237_v0 }
 0x18a   : > { %v649_v22 = vpop.permute.xlu0 %648 }
 0x18f   : > { %951 = vmatmul.mubr.msk.bf16.vlgmr.msra.gmra.mxu1 %vm310_vm2, %v419_v15 }
 0x190   : > { %961 = vmatpush3.bf16.xpose.msra.mxu1 %v541_v18  ;;  %962 = vmatprep.mubr.msk.bf16.mxu1 %vm1238_vm0, %v1237_v0 }
 0x191   : > { %972 = vmatprep.subr.bf16.mxu1 %v1237_v0 }
 0x197   : > { %963 = vmatmul.mubr.msk.bf16.vlgmr.msra.gmra.mxu1 %vm310_vm2, %v534_v20 }
 0x198   : > { %973 = vmatpush3.bf16.xpose.msra.mxu1 %v656_v21  ;;  %974 = vmatprep.mubr.msk.bf16.mxu1 %vm1238_vm0, %v1237_v0 }
 0x19f   : > { %975 = vmatmul.mubr.msk.bf16.vlgmr.msra.gmra.mxu1 %vm310_vm2, %v649_v22 }
 0x247   : > { %v351_v23 = vpop.f32.mrf.mxu1 }
 0x248   : > { %v357_v24 = vsel %vm310_vm2, %v351_v23, -inf }
 0x249   : > { %358 = vmax.xlane.f32.xlu1 %v357_v24  ;;  %v940_v25 = vpop.f32.mrf.mxu1 }
 0x24b   : > { %v354_v26 = vpop.f32.mrf.mxu1 }
 0x24d   : > { %v941_v27 = vpop.f32.mrf.mxu1 }
 0x24f   : > { %v462_v28 = vpop.f32.mrf.mxu1 }
 0x250   : > { %v468_v29 = vsel %vm310_vm2, %v462_v28, -inf }
 0x251   : > { %469 = vmax.xlane.f32.xlu0 %v468_v29  ;;  %v952_v30 = vpop.f32.mrf.mxu1 }
 0x253   : > { %v465_v31 = vpop.f32.mrf.mxu1 }
 0x255   : > { %v953_v32 = vpop.f32.mrf.mxu1 }
 0x257   : > { %v577_v33 = vpop.f32.mrf.mxu1 }
 0x258   : > { %v583_v34 = vsel %vm310_vm2, %v577_v33, -inf }
 0x259   : > { %584 = vmax.xlane.f32.xlu0 %v583_v34  ;;  %v964_v35 = vpop.f32.mrf.mxu1 }
 0x25b   : > { %v580_v36 = vpop.f32.mrf.mxu1 }
 0x25d   : > { %v965_v37 = vpop.f32.mrf.mxu1 }
 0x25f   : > { %v692_v38 = vpop.f32.mrf.mxu1 }
 0x260   : > { %v698_v39 = vsel %vm310_vm2, %v692_v38, -inf }
 0x261   : > { %699 = vmax.xlane.f32.xlu1 %v698_v39  ;;  %v976_v40 = vpop.f32.mrf.mxu1 }
 0x263   : > { %v695_v41 = vpop.f32.mrf.mxu1 }
 0x265   : > { %v977_v42 = vpop.f32.mrf.mxu1 }
 0x2d2   : > { %v359_v43 = vpop.xlane.xlu1 %358 }
 0x2d3   : > { %v360_v44 = vsub.f32 %v351_v23, %v359_v43 }
 0x2d5   : > { %1077 = vpow2.f32 %v360_v44 }
 0x2da   : > { %v470_v45 = vpop.xlane.xlu0 %469 }
 0x2db   : > { %v471_v46 = vsub.f32 %v462_v28, %v470_v45 }
 0x2dd   : > { %1079 = vpow2.f32 %v471_v46 }
 0x2e2   : > { %v1078_v47 = vpop.eup %1077  ;;  %v585_v48 = vpop.xlane.xlu0 %584 }
 0x2e3   : > { %v586_v49 = vsub.f32 %v577_v33, %v585_v48  ;;  %v362_v50 = vsel %vm310_vm2, %v1078_v47, 0.0 }
 0x2e4   : > { %363 = vadd.xlane.f32.xlu0 %v362_v50 }
 0x2e5   : > { %1081 = vpow2.f32 %v586_v49 }
 0x2ea   : > { %v1080_v51 = vpop.eup %1079  ;;  %v700_v55 = vpop.xlane.xlu1 %699 }
 0x2eb   : > { %v473_v52 = vsel %vm310_vm2, %v1080_v51, 0.0  ;;  %v701_v56 = vsub.f32 %v692_v38, %v700_v55 }
 0x2ec   : > { %474 = vadd.xlane.f32.xlu1 %v473_v52 }
 0x2ed   : > { %1083 = vpow2.f32 %v701_v56 }
 0x2f2   : > { %v1082_v53 = vpop.eup %1081 }
 0x2f3   : > { %v588_v54 = vsel %vm310_vm2, %v1082_v53, 0.0 }
 0x2f4   : > { %589 = vadd.xlane.f32.xlu0 %v588_v54 }
 0x2fa   : > { %v1084_v57 = vpop.eup %1083 }
 0x2fb   : > { %v703_v58 = vsel %vm310_vm2, %v1084_v57, 0.0 }
 0x2fd   : > { %479 = vrot.lane.b32.xlu1 %v1416_v9, %s1246_s6  ;;  %s1151_s6 = sshll.u32 %s1253_s5, 4  ;;  %s1152_s6 = int_to_ptr.vmem [resolvable:$false] %s1151_s6 }
 0x2fe   : > { %s1153_s15 = scalar_lea.vmem %s1152_s6, 256  ;;  %p1154_p0 = scmp.lt.s32.totalorder %s779_s24, %s1152_s6 }
 0x2ff   : > { %p1155_p2 = scmp.lt.s32.totalorder %s1153_s15, %s1147_s21 }
 0x301   : > { %p1156_p3 = por %p1155_p2, %p1154_p0 }
 0x303   : > { %p1157_p5 = pnand %p1156_p3, %p1150_p10 }
 0x30a   : > { %368 = vrot.lane.b32.xlu0 %v1416_v9, %s1247_s7 }
 0x30e   : > { %709 = vrot.lane.b32.xlu0 %v1416_v9, %s1248_s10 }
 0x321   : > { %704 = vadd.xlane.f32.xlu1 %v703_v58 }
 0x332   : > { %594 = vrot.lane.b32.xlu1 %v1416_v9, %s1249_s25 }
 0x36d   : > { %v364_v59 = vpop.xlane.xlu0 %363 }
 0x36e   : > { %1085 = vrcp.f32 %v364_v59 }
 0x375   : > { %v475_v60 = vpop.xlane.xlu1 %474 }
 0x376   : > { %1087 = vrcp.f32 %v475_v60 }
 0x379   : > { %v480_v3 = vpop.permute.xlu1 %479 }
 0x37a   : > { %v485_v6 = vsel %vm373_vm3, %v480_v3, 0 }
 0x37b   : > { %v1086_v61 = vpop.eup %1085 }
 0x37c   : > { %v366_v63 = vmul.f32 %v1086_v61, %v1078_v47 }
 0x37d   : > { %v590_v62 = vpop.xlane.xlu0 %589 }
 0x37e   : > { %v367_v4 = vpack.c.bf16 %v366_v63, %v366_v63  ;;  %1089 = vrcp.f32 %v590_v62 }
 0x381   : > { %v369_v1 = vpop.permute.xlu0 %368 }
 0x382   : > { %v375_v2 = vsel %vm373_vm3, %v369_v1, 0 }
 0x383   : > { %943 = vmatpush3.bf16.msra.mxu0 %v375_v2  ;;  %v1088_v5 = vpop.eup %1087 }
 0x384   : > { %954 = vmatprep.subr.bf16.mxu0 %v1237_v0  ;;  %v477_v7 = vmul.f32 %v1088_v5, %v1080_v51 }
 0x385   : > { %v710_v14 = vpop.permute.xlu0 %709 }
 0x386   : > { %945 = vmatmul.mubr.msk.bf16.vlgmr.msra.gmra.mxu0 %vm310_vm2, %v367_v4  ;;  %v478_v8 = vpack.c.bf16 %v477_v7, %v477_v7  ;;  %v715_v16 = vsel %vm373_vm3, %v710_v14, 0 }
 0x387   : > { %955 = vmatpush3.bf16.msra.mxu0 %v485_v6  ;;  %956 = vmatprep.mubr.msk.bf16.mxu0 %vm1238_vm0, %v1237_v0 }
 0x388   : > { %966 = vmatprep.subr.bf16.mxu0 %v1237_v0 }
 0x38b   : > { %v1090_v9 = vpop.eup %1089 }
 0x38c   : > { %v592_v11 = vmul.f32 %v1090_v9, %v1082_v53 }
 0x38e   : > { %957 = vmatmul.mubr.msk.bf16.vlgmr.msra.gmra.mxu0 %vm310_vm2, %v478_v8  ;;  %v593_v15 = vpack.c.bf16 %v592_v11, %v592_v11 }
 0x38f   : > { %968 = vmatprep.mubr.msk.bf16.mxu0 %vm1238_vm0, %v1237_v0 }
 0x3aa   : > { %v705_v10 = vpop.xlane.xlu1 %704 }
 0x3ab   : > { %1091 = vrcp.f32 %v705_v10 }
 0x3ae   : > { %v595_v12 = vpop.permute.xlu1 %594 }
 0x3af   : > { %v600_v13 = vsel %vm373_vm3, %v595_v12, 0 }
 0x3b0   : > { %967 = vmatpush3.bf16.msra.mxu0 %v600_v13 }
 0x3b1   : > { %978 = vmatprep.subr.bf16.mxu0 %v1237_v0 }
 0x3b3   : > { %969 = vmatmul.mubr.msk.bf16.vlgmr.msra.gmra.mxu0 %vm310_vm2, %v593_v15 }
 0x3b4   : > { %979 = vmatpush3.bf16.msra.mxu0 %v715_v16  ;;  %980 = vmatprep.mubr.msk.bf16.mxu0 %vm1238_vm0, %v1237_v0 }
 0x3b8   : > { %v1092_v17 = vpop.eup %1091 }
 0x3b9   : > { %v707_v18 = vmul.f32 %v1092_v17, %v1084_v57 }
 0x3bb   : > { %v708_v19 = vpack.c.bf16 %v707_v18, %v707_v18 }
 0x3bd   : > { %981 = vmatmul.mubr.msk.bf16.vlgmr.msra.gmra.mxu0 %vm310_vm2, %v708_v19 }
 0x446   : > { %v411_v20 = vpop.f32.mrf.mxu0 }
 0x447   : > { %417 = vst.msk [vmem:[%s1474_s18] sm:$0xff] %vm310_vm2, %v411_v20 }
 0x448   : > { %v946_v21 = vpop.f32.mrf.mxu0 }
 0x44a   : > { %v414_v22 = vpop.f32.mrf.mxu0 }
 0x44c   : > { %v947_v23 = vpop.f32.mrf.mxu0 }
 0x44e   : > { %v521_v24 = vpop.f32.mrf.mxu0 }
 0x44f   : > { %528 = vrot.lane.b32.xlu1 %v521_v24, %s1250_s26 }
 0x450   : > { %v958_v25 = vpop.f32.mrf.mxu0 }
 0x452   : > { %v524_v0 = vpop.f32.mrf.mxu0 }
 0x454   : > { %v959_v26 = vpop.f32.mrf.mxu0 }
 0x473   : > { %v636_v27 = vpop.f32.mrf.mxu0 }
 0x474   : > { %643 = vrot.lane.b32.xlu0 %v636_v27, %s1251_s20 }
 0x475   : > { %v970_v28 = vpop.f32.mrf.mxu0 }
 0x477   : > { %v639_v29 = vpop.f32.mrf.mxu0 }
 0x479   : > { %v971_v30 = vpop.f32.mrf.mxu0 }
 0x47d   : > { %v751_v31 = vpop.f32.mrf.mxu0 }
 0x47e   : > { %758 = vrot.lane.b32.xlu1 %v751_v31, %s1252_s11 }
 0x47f   : > { %v982_v32 = vpop.f32.mrf.mxu0 }
 0x481   : > { %v754_v33 = vpop.f32.mrf.mxu0 }
 0x483   : > { %v983_v34 = vpop.f32.mrf.mxu0 }
 0x4c1   : > { %v529_v35 = vpop.permute.xlu1 %528 }
 0x4c2   : > { %532 = vst.msk [vmem:[%s1474_s18] sm:$0xff] %vm531_vm4, %v529_v35 }
 0x4e6   : > { %v644_v36 = vpop.permute.xlu0 %643 }
 0x4e7   : > { %647 = vst.msk [vmem:[%s1474_s18] sm:$0xff] %vm646_vm5, %v644_v36 }
 0x4f0   : > { %v759_v37 = vpop.permute.xlu1 %758 }
 0x4f1   : > { %762 = vst.msk [vmem:[%s1474_s18] sm:$0xff] %vm761_vm6, %v759_v37 }
 0x4f2   : > { %1160 = shalt.err (!%p1157_p5)
}
 0x4f3   : > { %s1161_s7 = scalar_lea.hbm %s1485_s30, 128  ;;  %s1165_s25 = scalar_lea.hbm %s1531_s3, 256 }
 0x4f4   : > { %p1162_p7 = scmp.ne.s32.totalorder %s1485_s30, %s1161_s7  ;;  %p1166_p9 = scmp.lt.s32.totalorder %s1485_s30, %s1531_s3 }
 0x4f5   : > { %p1167_p11 = scmp.lt.s32.totalorder %s1165_s25, %s1161_s7 }
 0x4f6   : > { %p1163_p6 = pnand %p1162_p7, %p1361_p13 }
 0x4f7   : > { %p1168_p12 = por %p1167_p11, %p1166_p9 }
 0x4f8   : > { %p1164_p4 = pneg %p1163_p6 }
 0x4fa   : > { %p1169_p1 = pnand %p1168_p12, %p1164_p4 }
 0x4fc   : > { %1172 = shalt.err (!%p1169_p1)
}
 0x4fd   : > { %990 = dma.vmem_to_hbm [thread:$0]  (%p1361_p13), %s779_s24, 128, %s1485_s30, %s764_s4  }
 0x4fe PF: > { %s790_s20 = sand.u32 1, %s1211_s12   ;;  %p1543_p8 = scmp.ne.s32.totalorder %s1536_s23, 0 }
 0x4ff   : > { %p1544_p10 = scmp.ge.s32.totalorder %s1231_s17, 2  ;;  %s791_s11 = scalar_lea.sflag [#allocation4], %s790_s20 }
 0x501   : > { %p1001_p0 = pnand %p1544_p10, %p1543_p8 }
 0x503   : > { %p1002_p2 = pneg %p1001_p0 }
 0x505   : > { %1206 = dma.done.wait (%p1002_p2), %s791_s11, 128  }
 0x506   : > { %1208 = vsyncadd (%p1002_p2), %s791_s11, 4294967168  ;;  %s20_s17 = sadd.s32 1, %s1231_s17   ;;  %s1545_s12 = smov %s1215_s13 }
 0x507   : > { %p17_p3 = scmp.ge.s32.totalorder %s20_s17, 4   ;;  %s1546_s13 = smov %s1219_s14 }
 0x508   : > { %s1547_s14 = smov %s1370_s19  ;;  %s1548_s15 = smov %s1227_s16 }
 0x509   : > { %s1549_s16 = smov %s1551_s28  ;;  %19 = sbr.rel (!%p17_p3) target bundleno = 7 (0x7), region = 85 }
 0x50e   :  { %796 = vsyncpa [#allocation3], 1 }
 0x50f   :  { %798 = vsyncpa [#allocation3 + $0x1], 1 }
 0x510   :  { %799 = vsyncpa [#allocation6], 1 }
 0x511   :  { %800 = vsyncpa [#allocation4], 1 }
 0x512   :  { %802 = vsyncpa [#allocation4 + $0x1], 1 }

</bundles_post_ra>
